<compile_context>
chip_gen: v7x
topology: tpu7x:2x2x1
jax: 0.10.0
libtpu: 0.0.40
codegen_flags: <defaults>
</compile_context>

<pallas_src>
import functools

import jax
import jax.numpy as jnp
import numpy as np
from jax.experimental import pallas as pl
from jax.experimental.pallas import tpu as pltpu

EPS = 1e-5
KSIZE = 3


def _conv3_rows(z, w_ref, lh):
    """Conv1d(k=3, padding=1, bias=False) over flattened per-sample rows.

    z:     (R, Cin) float32; R rows = (R // lh) whole samples of length lh.
    w_ref: (3*Cin, Cout) bf16 VMEM ref, rows ordered [tap -1 | tap 0 | tap +1].
    Returns (R, Cout) float32.

    The +/-1 taps are cyclic sublane rolls (XLU) of the whole row block; rows
    that would wrap across a sample boundary are masked to zero (the conv's
    zero padding).  The three taps are fused into a single MXU matmul by
    concatenating them along the channel (lane) axis.
    """
    r = z.shape[0]
    row = jax.lax.broadcasted_iota(jnp.int32, z.shape, 0)
    pos = (row & (lh - 1)) if (lh & (lh - 1)) == 0 else (row % lh)
    z_prev = jnp.where(pos > 0, pltpu.roll(z, 1, axis=0), 0.0)           # z[l-1]
    z_next = jnp.where(pos < lh - 1, pltpu.roll(z, r - 1, axis=0), 0.0)  # z[l+1]
    z_cat = jnp.concatenate([z_prev, z, z_next], axis=-1)                # (R, 3*Cin)
    return jnp.dot(z_cat.astype(jnp.bfloat16), w_ref[...],
                   preferred_element_type=jnp.float32)


def _pool_conv1_kernel(xp_ref, w1_ref, h1_ref, s1_ref, q1_ref, *, cin, lh):
    # xp_ref: (R, 2*Cin) pooling pairs (even phase | odd phase), rows = samples.
    x = xp_ref[...]
    pooled = jnp.maximum(x[:, :cin], x[:, cin:])          # MaxPool1d(2) on VPU
    h = _conv3_rows(pooled, w1_ref, lh)                   # (R, Cmid) f32
    h1_ref[...] = h.astype(h1_ref.dtype)                  # bf16 intermediate
    # BN1 per-block partial statistics, accumulated in f32 BEFORE the downcast.
    s1_ref[0] = jnp.sum(h, axis=0, keepdims=True)
    q1_ref[0] = jnp.sum(h * h, axis=0, keepdims=True)


def _bn1_conv2_stats_kernel(h1_ref, sc1_ref, sh1_ref, w2_ref, s2_ref, q2_ref, *, lh):
    # BN1 (precomputed scale/shift) + ReLU + Conv1d(Cmid->Cout); emit BN2 sums
    # only -- h2 is never written back to HBM.
    a = jnp.maximum(h1_ref[...].astype(jnp.float32) * sc1_ref[...] + sh1_ref[...], 0.0)
    h2 = _conv3_rows(a, w2_ref, lh)                       # (R, Cout) f32
    s2_ref[0] = jnp.sum(h2, axis=0, keepdims=True)
    q2_ref[0] = jnp.sum(h2 * h2, axis=0, keepdims=True)


def _bn1_conv2_bn2_out_kernel(h1_ref, sc1_ref, sh1_ref, w2_ref, sc2_ref, sh2_ref,
                              o_ref, *, lh, nsamp):
    # Recompute BN1+ReLU+conv2 from h1 (identical bf16 inputs/weights as pass B,
    # so BN2 statistics are self-consistent), apply BN2+ReLU, emit in PyTorch
    # layout (nsamp, Cout, Lh) via an in-kernel batched transpose.
    a = jnp.maximum(h1_ref[...].astype(jnp.float32) * sc1_ref[...] + sh1_ref[...], 0.0)
    h2 = _conv3_rows(a, w2_ref, lh)
    y = jnp.maximum(h2 * sc2_ref[...] + sh2_ref[...], 0.0)   # (R, Cout)
    y3 = y.reshape(nsamp, lh, y.shape[-1])                   # (nsamp, Lh, Cout)
    o_ref[...] = jnp.transpose(y3, (0, 2, 1)).astype(o_ref.dtype)


def _bn_scale_shift(s_part, q_part, gamma, beta, m):
    """Finalise BN from per-block partial sums (tiny XLA ops between passes)."""
    s = jnp.sum(s_part, axis=0)                          # (1, C)
    q = jnp.sum(q_part, axis=0)
    mu = s / m
    var = jnp.maximum(q / m - mu * mu, 0.0)              # clamp f32 cancellation
    scale = gamma * jax.lax.rsqrt(var + EPS)
    shift = beta - mu * scale
    return scale, shift


def _pick_samples_per_block(n, lh, ch):
    """Samples per grid step: ~2 MiB target for the largest per-block f32 slab,
    row count kept sublane-aligned (bf16 tile) and a divisor of N."""
    rows_target = max(lh, (2 << 20) // max(1, 4 * ch))
    b = max(1, min(n, rows_target // lh))
    while b > 1 and (n % b != 0 or (b * lh) % 16 != 0):
        b -= 1
    if n % b != 0 or ((b * lh) % 16 != 0 and b != n):
        b = n   # whole batch in one step: block == full array, always legal
    # TODO(synk): add Lh-chunk tiling with a 1-row halo for samples too long to
    # fit a single per-group block in VMEM (not needed at these sizes).
    return b


def down_forward(x_ncl, w1_oik, g1, b1, w2_oik, g2, b2, down_sampling=2):
    """Down.forward.  x_ncl: (N, Cin, L).  Returns (N, Cout, L // down_sampling)."""
    assert down_sampling == 2, "kernel specialised to the module default MaxPool1d(2)"
    N, Cin, L = x_ncl.shape
    Lh = L // 2
    Cmid = w1_oik.shape[0]
    Cout = w2_oik.shape[0]
    M = float(N * Lh)              # rows entering each BatchNorm (batch x length)
    f32, bf16 = jnp.float32, jnp.bfloat16

    bsamp = _pick_samples_per_block(N, Lh, 3 * max(Cin, Cmid, Cout))
    R = bsamp * Lh                 # rows per grid step
    G = N // bsamp                 # grid length

    # Glue (one fused XLA op): NCL -> channels-last pooling pairs, flattened rows
    # (N*Lh, 2*Cin); columns [0:Cin] = even positions, [Cin:2*Cin] = odd positions.
    x_pairs = (jnp.transpose(x_ncl[:, :, :2 * Lh], (0, 2, 1))
               .reshape(N * Lh, 2 * Cin).astype(f32))

    # PyTorch Conv1d weight (O, I, K) -> fused-tap matmul operand (3*I, O), bf16.
    w1 = jnp.transpose(w1_oik, (2, 1, 0)).reshape(KSIZE * Cin, Cmid).astype(bf16)
    w2 = jnp.transpose(w2_oik, (2, 1, 0)).reshape(KSIZE * Cmid, Cout).astype(bf16)
    g1_ = g1.reshape(1, Cmid).astype(f32)
    b1_ = b1.reshape(1, Cmid).astype(f32)
    g2_ = g2.reshape(1, Cout).astype(f32)
    b2_ = b2.reshape(1, Cout).astype(f32)

    row_block = lambda c: pl.BlockSpec((R, c), lambda i: (i, 0))       # per-group rows
    fixed2 = lambda shape: pl.BlockSpec(shape, lambda i: (0, 0))       # resident operand
    part3 = lambda c: pl.BlockSpec((1, 1, c), lambda i: (i, 0, 0))     # per-step partials

    def nbytes(shape, dtype):
        return int(np.prod(shape)) * np.dtype(dtype).itemsize

    def cparams(block_bytes):
        # ~2 pipeline buffers per operand + temporaries; never promise more than
        # v7x's 64 MiB physical VMEM (cap at 48 MiB for headroom).
        limit = int(min(48 << 20, max(32 << 20, 4 * block_bytes + (4 << 20))))
        return pltpu.CompilerParams(dimension_semantics=("parallel",),
                                    vmem_limit_bytes=limit)

    # --- pass A: MaxPool1d(2) + Conv1d(Cin -> Cmid) + BN1 partial sums. --------
    bytes_a = (nbytes((R, 2 * Cin), f32) + nbytes((KSIZE * Cin, Cmid), bf16)
               + nbytes((R, 3 * Cin), f32) + nbytes((R, Cmid), f32)
               + nbytes((R, Cmid), bf16) + 2 * nbytes((1, Cmid), f32))
    h1, s1p, q1p = pl.pallas_call(
        functools.partial(_pool_conv1_kernel, cin=Cin, lh=Lh),
        grid=(G,),
        in_specs=[row_block(2 * Cin), fixed2((KSIZE * Cin, Cmid))],
        out_specs=(row_block(Cmid), part3(Cmid), part3(Cmid)),
        out_shape=(jax.ShapeDtypeStruct((N * Lh, Cmid), bf16),
                   jax.ShapeDtypeStruct((G, 1, Cmid), f32),
                   jax.ShapeDtypeStruct((G, 1, Cmid), f32)),
        compiler_params=cparams(bytes_a),
    )(x_pairs, w1)
    sc1, sh1 = _bn_scale_shift(s1p, q1p, g1_, b1_, M)

    # --- pass B: BN1 + ReLU + Conv1d(Cmid -> Cout); BN2 partial sums only. -----
    bytes_b = (nbytes((R, Cmid), bf16) + 2 * nbytes((1, Cmid), f32)
               + nbytes((KSIZE * Cmid, Cout), bf16)
               + nbytes((R, 3 * Cmid), f32) + nbytes((R, Cout), f32)
               + 2 * nbytes((1, Cout), f32))
    s2p, q2p = pl.pallas_call(
        functools.partial(_bn1_conv2_stats_kernel, lh=Lh),
        grid=(G,),
        in_specs=[row_block(Cmid), fixed2((1, Cmid)), fixed2((1, Cmid)),
                  fixed2((KSIZE * Cmid, Cout))],
        out_specs=(part3(Cout), part3(Cout)),
        out_shape=(jax.ShapeDtypeStruct((G, 1, Cout), f32),
                   jax.ShapeDtypeStruct((G, 1, Cout), f32)),
        compiler_params=cparams(bytes_b),
    )(h1, sc1, sh1, w2)
    sc2, sh2 = _bn_scale_shift(s2p, q2p, g2_, b2_, M)

    # --- pass C: recompute BN1+ReLU+conv2 from h1, BN2 + ReLU, emit (N,Cout,Lh).
    bytes_c = (nbytes((R, Cmid), bf16) + 2 * nbytes((1, Cmid), f32)
               + nbytes((KSIZE * Cmid, Cout), bf16) + 2 * nbytes((1, Cout), f32)
               + nbytes((R, 3 * Cmid), f32) + 2 * nbytes((R, Cout), f32))
    out = pl.pallas_call(
        functools.partial(_bn1_conv2_bn2_out_kernel, lh=Lh, nsamp=bsamp),
        grid=(G,),
        in_specs=[row_block(Cmid), fixed2((1, Cmid)), fixed2((1, Cmid)),
                  fixed2((KSIZE * Cmid, Cout)), fixed2((1, Cout)), fixed2((1, Cout))],
        out_specs=pl.BlockSpec((bsamp, Cout, Lh), lambda i: (i, 0, 0)),
        out_shape=jax.ShapeDtypeStruct((N, Cout, Lh), f32),
        compiler_params=cparams(bytes_c),
    )(h1, sc1, sh1, w2, sc2, sh2)
    return out


def _ref_forward(x, w1, g1, b1, w2, g2, b2):
    """Plain-JAX reference mirroring the PyTorch module (training-mode BN)."""
    N, C, L = x.shape
    xp = jnp.max(x[:, :, :(L // 2) * 2].reshape(N, C, L // 2, 2), axis=-1)

    def conv1d(z, w):
        zpad = jnp.pad(z, ((0, 0), (0, 0), (1, 1)))
        Lz = z.shape[2]
        return sum(jnp.einsum('ncl,oc->nol', zpad[:, :, k:k + Lz], w[:, :, k])
                   for k in range(KSIZE))

    def bn_relu(z, g, b):
        mu = z.mean(axis=(0, 2), keepdims=True)
        var = ((z - mu) ** 2).mean(axis=(0, 2), keepdims=True)
        zn = (z - mu) * jax.lax.rsqrt(var + EPS) * g[None, :, None] + b[None, :, None]
        return jnp.maximum(zn, 0.0)

    h = bn_relu(conv1d(xp, w1), g1, b1)
    return bn_relu(conv1d(h, w2), g2, b2)


if __name__ == "__main__":
    N, Cin, Cout, L = 2, 4, 8, 16   # mid_channels defaults to out_channels
    key = jax.random.PRNGKey(0)
    kx, k1, k2 = jax.random.split(key, 3)

    x = jax.random.normal(kx, (N, Cin, L), dtype=jnp.float32)

    # Deterministic synthetic parameters (PyTorch shapes; BN affine at defaults).
    w1 = 0.1 * jax.random.normal(k1, (Cout, Cin, KSIZE), dtype=jnp.float32)
    w2 = 0.1 * jax.random.normal(k2, (Cout, Cout, KSIZE), dtype=jnp.float32)
    g1 = jnp.ones((Cout,), jnp.float32)
    b1 = jnp.zeros((Cout,), jnp.float32)
    g2 = jnp.ones((Cout,), jnp.float32)
    b2 = jnp.zeros((Cout,), jnp.float32)
    # TODO(synk): BatchNorm running-mean/var buffer updates (training-time side
    # effect) are not modeled; they do not affect the forward output.

    down_fn = jax.jit(down_forward)
    y = jax.block_until_ready(down_fn(x, w1, g1, b1, w2, g2, b2))
    y_ref = jax.block_until_ready(_ref_forward(x, w1, g1, b1, w2, g2, b2))

    assert y.shape == (N, Cout, L // 2)
    # bf16 conv operands + bf16 h1 intermediate vs f32 reference -> loose tolerance.
    np.testing.assert_allclose(np.asarray(y), np.asarray(y_ref), atol=3e-2, rtol=3e-2)
    print("KERNEL_OK")
</pallas_src>

<mosaic_0001>
module attributes {stable_mosaic.version = 11 : i64} {
  func.func @_pool_conv1_kernel(%arg0: i32, %arg1: memref<16x8xf32, #tpu.memory_space<vmem>>, %arg2: memref<12x8xbf16, #tpu.memory_space<vmem>>, %arg3: memref<16x8xbf16, #tpu.memory_space<vmem>>, %arg4: memref<1x1x8xf32, #tpu.memory_space<vmem>>, %arg5: memref<1x1x8xf32, #tpu.memory_space<vmem>>) attributes {dimension_semantics = [#tpu.dimension_semantics<parallel>], iteration_bounds = array<i64: 1>, scalar_prefetch = 0 : i64, scratch_operands = 0 : i64, tpu.core_type = #tpu.core_type<tc>, window_params = [{transform_indices = @transform_0, window_bounds = array<i64: 16, 8>}, {pipeline_mode = #tpu.pipeline_mode<synchronous>, transform_indices = @transform_1, window_bounds = array<i64: 12, 8>}, {transform_indices = @transform_2, window_bounds = array<i64: 16, 8>}, {transform_indices = @transform_3, window_bounds = array<i64: 1, 1, 8>}, {transform_indices = @transform_4, window_bounds = array<i64: 1, 1, 8>}]} {
    %c0 = arith.constant 0 : index
    %c0_0 = arith.constant 0 : index
    %0 = vector.load %arg1[%c0, %c0_0] : memref<16x8xf32, #tpu.memory_space<vmem>>, vector<16x8xf32>
    %1 = vector.extract_strided_slice %0 {offsets = [0, 0], sizes = [16, 4], strides = [1, 1]} : vector<16x8xf32> to vector<16x4xf32>
    %2 = vector.extract_strided_slice %0 {offsets = [0, 4], sizes = [16, 4], strides = [1, 1]} : vector<16x8xf32> to vector<16x4xf32>
    %3 = arith.maximumf %1, %2 : vector<16x4xf32>
    %4 = tpu.iota {dimensions = array<i32: 0>} : vector<16x4xi32>
    %c7_i32 = arith.constant 7 : i32
    %5 = vector.broadcast %c7_i32 : i32 to vector<16x4xi32>
    %6 = arith.andi %4, %5 : vector<16x4xi32>
    %c0_i32 = arith.constant 0 : i32
    %7 = vector.broadcast %c0_i32 : i32 to vector<16x4xi32>
    %8 = arith.cmpi sgt, %6, %7 : vector<16x4xi32>
    %c1_i32 = arith.constant 1 : i32
    %9 = tpu.dynamic_rotate %3 by %c1_i32 dim 0 : vector<16x4xf32>, i32 -> vector<16x4xf32>
    %cst = arith.constant 0.000000e+00 : f32
    %10 = vector.broadcast %cst : f32 to vector<16x4xf32>
    %11 = arith.select %8, %9, %10 : vector<16x4xi1>, vector<16x4xf32>
    %c7_i32_1 = arith.constant 7 : i32
    %12 = vector.broadcast %c7_i32_1 : i32 to vector<16x4xi32>
    %13 = arith.cmpi slt, %6, %12 : vector<16x4xi32>
    %c15_i32 = arith.constant 15 : i32
    %14 = tpu.dynamic_rotate %3 by %c15_i32 dim 0 : vector<16x4xf32>, i32 -> vector<16x4xf32>
    %cst_2 = arith.constant 0.000000e+00 : f32
    %15 = vector.broadcast %cst_2 : f32 to vector<16x4xf32>
    %16 = arith.select %13, %14, %15 : vector<16x4xi1>, vector<16x4xf32>
    %17 = tpu.concatenate %11, %3, %16 in 1 : vector<16x4xf32>, vector<16x4xf32>, vector<16x4xf32> -> vector<16x12xf32>
    %18 = arith.truncf %17 : vector<16x12xf32> to vector<16x12xbf16>
    %c0_3 = arith.constant 0 : index
    %c0_4 = arith.constant 0 : index
    %19 = vector.load %arg2[%c0_3, %c0_4] : memref<12x8xbf16, #tpu.memory_space<vmem>>, vector<12x8xbf16>
    %cst_5 = arith.constant dense<0.000000e+00> : vector<16x8xf32>
    %20 = tpu.matmul %18, %19, %cst_5 {dimension_numbers = #tpu.dot_dimension_numbers<[1], [0], [0], [1], [0, 0, 1, 1], [], []>} : vector<16x12xbf16>, vector<12x8xbf16>, vector<16x8xf32> -> vector<16x8xf32>
    %21 = arith.truncf %20 : vector<16x8xf32> to vector<16x8xbf16>
    %c0_6 = arith.constant 0 : index
    %c0_7 = arith.constant 0 : index
    %22 = vector.load %arg3[%c0_6, %c0_7] : memref<16x8xbf16, #tpu.memory_space<vmem>>, vector<16x8xbf16>
    tpu.vector_store %arg3[%c0_6, %c0_7], %21 {strides = array<i32>} : memref<16x8xbf16, #tpu.memory_space<vmem>>, vector<16x8xbf16>,
    %cst_8 = arith.constant dense<0.000000e+00> : vector<8xf32>
    %23 = vector.multi_reduction <add>, %20, %cst_8 [0] : vector<16x8xf32> to vector<8xf32>
    %24 = vector.shape_cast %23 : vector<8xf32> to vector<1x8xf32>
    %c0_9 = arith.constant 0 : index
    %c0_10 = arith.constant 0 : index
    %c0_11 = arith.constant 0 : index
    %25 = vector.load %arg4[%c0_9, %c0_10, %c0_11] : memref<1x1x8xf32, #tpu.memory_space<vmem>>, vector<1x1x8xf32>
    %26 = vector.shape_cast %25 : vector<1x1x8xf32> to vector<1x8xf32>
    %27 = vector.shape_cast %24 : vector<1x8xf32> to vector<1x1x8xf32>
    tpu.vector_store %arg4[%c0_9, %c0_10, %c0_11], %27 {strides = array<i32>} : memref<1x1x8xf32, #tpu.memory_space<vmem>>, vector<1x1x8xf32>,
    %28 = arith.mulf %20, %20 : vector<16x8xf32>
    %cst_12 = arith.constant dense<0.000000e+00> : vector<8xf32>
    %29 = vector.multi_reduction <add>, %28, %cst_12 [0] : vector<16x8xf32> to vector<8xf32>
    %30 = vector.shape_cast %29 : vector<8xf32> to vector<1x8xf32>
    %c0_13 = arith.constant 0 : index
    %c0_14 = arith.constant 0 : index
    %c0_15 = arith.constant 0 : index
    %31 = vector.load %arg5[%c0_13, %c0_14, %c0_15] : memref<1x1x8xf32, #tpu.memory_space<vmem>>, vector<1x1x8xf32>
    %32 = vector.shape_cast %31 : vector<1x1x8xf32> to vector<1x8xf32>
    %33 = vector.shape_cast %30 : vector<1x8xf32> to vector<1x1x8xf32>
    tpu.vector_store %arg5[%c0_13, %c0_14, %c0_15], %33 {strides = array<i32>} : memref<1x1x8xf32, #tpu.memory_space<vmem>>, vector<1x1x8xf32>,
    return
  }
  func.func @transform_0(%arg0: i32) -> (i32, i32) {
    %c0_i32 = arith.constant 0 : i32
    %c0_i32_0 = arith.constant 0 : i32
    return %arg0, %c0_i32 : i32, i32
  }
  func.func @transform_1(%arg0: i32) -> (i32, i32) {
    %c0_i32 = arith.constant 0 : i32
    %c0_i32_0 = arith.constant 0 : i32
    %c0_i32_1 = arith.constant 0 : i32
    return %c0_i32, %c0_i32_0 : i32, i32
  }
  func.func @transform_2(%arg0: i32) -> (i32, i32) {
    %c0_i32 = arith.constant 0 : i32
    %c0_i32_0 = arith.constant 0 : i32
    return %arg0, %c0_i32 : i32, i32
  }
  func.func @transform_3(%arg0: i32) -> (i32, i32, i32) {
    %c0_i32 = arith.constant 0 : i32
    %c0_i32_0 = arith.constant 0 : i32
    %c0_i32_1 = arith.constant 0 : i32
    return %arg0, %c0_i32, %c0_i32_0 : i32, i32, i32
  }
  func.func @transform_4(%arg0: i32) -> (i32, i32, i32) {
    %c0_i32 = arith.constant 0 : i32
    %c0_i32_0 = arith.constant 0 : i32
    %c0_i32_1 = arith.constant 0 : i32
    return %arg0, %c0_i32, %c0_i32_0 : i32, i32, i32
  }
}

module attributes {stable_mosaic.version = 11 : i64} {
  func.func @_bn1_conv2_stats_kernel(%arg0: i32, %arg1: memref<16x8xbf16, #tpu.memory_space<vmem>>, %arg2: memref<1x8xf32, #tpu.memory_space<vmem>>, %arg3: memref<1x8xf32, #tpu.memory_space<vmem>>, %arg4: memref<24x8xbf16, #tpu.memory_space<vmem>>, %arg5: memref<1x1x8xf32, #tpu.memory_space<vmem>>, %arg6: memref<1x1x8xf32, #tpu.memory_space<vmem>>) attributes {dimension_semantics = [#tpu.dimension_semantics<parallel>], iteration_bounds = array<i64: 1>, scalar_prefetch = 0 : i64, scratch_operands = 0 : i64, tpu.core_type = #tpu.core_type<tc>, window_params = [{transform_indices = @transform_0, window_bounds = array<i64: 16, 8>}, {pipeline_mode = #tpu.pipeline_mode<synchronous>, transform_indices = @transform_1, window_bounds = array<i64: 1, 8>}, {pipeline_mode = #tpu.pipeline_mode<synchronous>, transform_indices = @transform_2, window_bounds = array<i64: 1, 8>}, {pipeline_mode = #tpu.pipeline_mode<synchronous>, transform_indices = @transform_3, window_bounds = array<i64: 24, 8>}, {transform_indices = @transform_4, window_bounds = array<i64: 1, 1, 8>}, {transform_indices = @transform_5, window_bounds = array<i64: 1, 1, 8>}]} {
    %c0 = arith.constant 0 : index
    %c0_0 = arith.constant 0 : index
    %0 = vector.load %arg1[%c0, %c0_0] : memref<16x8xbf16, #tpu.memory_space<vmem>>, vector<16x8xbf16>
    %1 = arith.extf %0 : vector<16x8xbf16> to vector<16x8xf32>
    %c0_1 = arith.constant 0 : index
    %c0_2 = arith.constant 0 : index
    %2 = vector.load %arg2[%c0_1, %c0_2] : memref<1x8xf32, #tpu.memory_space<vmem>>, vector<1x8xf32>
    %3 = vector.broadcast %2 : vector<1x8xf32> to vector<16x8xf32>
    %4 = arith.mulf %1, %3 : vector<16x8xf32>
    %c0_3 = arith.constant 0 : index
    %c0_4 = arith.constant 0 : index
    %5 = vector.load %arg3[%c0_3, %c0_4] : memref<1x8xf32, #tpu.memory_space<vmem>>, vector<1x8xf32>
    %6 = vector.broadcast %5 : vector<1x8xf32> to vector<16x8xf32>
    %7 = arith.addf %4, %6 : vector<16x8xf32>
    %cst = arith.constant 0.000000e+00 : f32
    %8 = vector.broadcast %cst : f32 to vector<16x8xf32>
    %9 = arith.maximumf %7, %8 : vector<16x8xf32>
    %10 = tpu.iota {dimensions = array<i32: 0>} : vector<16x8xi32>
    %c7_i32 = arith.constant 7 : i32
    %11 = vector.broadcast %c7_i32 : i32 to vector<16x8xi32>
    %12 = arith.andi %10, %11 : vector<16x8xi32>
    %c0_i32 = arith.constant 0 : i32
    %13 = vector.broadcast %c0_i32 : i32 to vector<16x8xi32>
    %14 = arith.cmpi sgt, %12, %13 : vector<16x8xi32>
    %c1_i32 = arith.constant 1 : i32
    %15 = tpu.dynamic_rotate %9 by %c1_i32 dim 0 : vector<16x8xf32>, i32 -> vector<16x8xf32>
    %cst_5 = arith.constant 0.000000e+00 : f32
    %16 = vector.broadcast %cst_5 : f32 to vector<16x8xf32>
    %17 = arith.select %14, %15, %16 : vector<16x8xi1>, vector<16x8xf32>
    %c7_i32_6 = arith.constant 7 : i32
    %18 = vector.broadcast %c7_i32_6 : i32 to vector<16x8xi32>
    %19 = arith.cmpi slt, %12, %18 : vector<16x8xi32>
    %c15_i32 = arith.constant 15 : i32
    %20 = tpu.dynamic_rotate %9 by %c15_i32 dim 0 : vector<16x8xf32>, i32 -> vector<16x8xf32>
    %cst_7 = arith.constant 0.000000e+00 : f32
    %21 = vector.broadcast %cst_7 : f32 to vector<16x8xf32>
    %22 = arith.select %19, %20, %21 : vector<16x8xi1>, vector<16x8xf32>
    %23 = tpu.concatenate %17, %9, %22 in 1 : vector<16x8xf32>, vector<16x8xf32>, vector<16x8xf32> -> vector<16x24xf32>
    %24 = arith.truncf %23 : vector<16x24xf32> to vector<16x24xbf16>
    %c0_8 = arith.constant 0 : index
    %c0_9 = arith.constant 0 : index
    %25 = vector.load %arg4[%c0_8, %c0_9] : memref<24x8xbf16, #tpu.memory_space<vmem>>, vector<24x8xbf16>
    %cst_10 = arith.constant dense<0.000000e+00> : vector<16x8xf32>
    %26 = tpu.matmul %24, %25, %cst_10 {dimension_numbers = #tpu.dot_dimension_numbers<[1], [0], [0], [1], [0, 0, 1, 1], [], []>} : vector<16x24xbf16>, vector<24x8xbf16>, vector<16x8xf32> -> vector<16x8xf32>
    %cst_11 = arith.constant dense<0.000000e+00> : vector<8xf32>
    %27 = vector.multi_reduction <add>, %26, %cst_11 [0] : vector<16x8xf32> to vector<8xf32>
    %28 = vector.shape_cast %27 : vector<8xf32> to vector<1x8xf32>
    %c0_12 = arith.constant 0 : index
    %c0_13 = arith.constant 0 : index
    %c0_14 = arith.constant 0 : index
    %29 = vector.load %arg5[%c0_12, %c0_13, %c0_14] : memref<1x1x8xf32, #tpu.memory_space<vmem>>, vector<1x1x8xf32>
    %30 = vector.shape_cast %29 : vector<1x1x8xf32> to vector<1x8xf32>
    %31 = vector.shape_cast %28 : vector<1x8xf32> to vector<1x1x8xf32>
    tpu.vector_store %arg5[%c0_12, %c0_13, %c0_14], %31 {strides = array<i32>} : memref<1x1x8xf32, #tpu.memory_space<vmem>>, vector<1x1x8xf32>,
    %32 = arith.mulf %26, %26 : vector<16x8xf32>
    %cst_15 = arith.constant dense<0.000000e+00> : vector<8xf32>
    %33 = vector.multi_reduction <add>, %32, %cst_15 [0] : vector<16x8xf32> to vector<8xf32>
    %34 = vector.shape_cast %33 : vector<8xf32> to vector<1x8xf32>
    %c0_16 = arith.constant 0 : index
    %c0_17 = arith.constant 0 : index
    %c0_18 = arith.constant 0 : index
    %35 = vector.load %arg6[%c0_16, %c0_17, %c0_18] : memref<1x1x8xf32, #tpu.memory_space<vmem>>, vector<1x1x8xf32>
    %36 = vector.shape_cast %35 : vector<1x1x8xf32> to vector<1x8xf32>
    %37 = vector.shape_cast %34 : vector<1x8xf32> to vector<1x1x8xf32>
    tpu.vector_store %arg6[%c0_16, %c0_17, %c0_18], %37 {strides = array<i32>} : memref<1x1x8xf32, #tpu.memory_space<vmem>>, vector<1x1x8xf32>,
    return
  }
  func.func @transform_0(%arg0: i32) -> (i32, i32) {
    %c0_i32 = arith.constant 0 : i32
    %c0_i32_0 = arith.constant 0 : i32
    return %arg0, %c0_i32 : i32, i32
  }
  func.func @transform_1(%arg0: i32) -> (i32, i32) {
    %c0_i32 = arith.constant 0 : i32
    %c0_i32_0 = arith.constant 0 : i32
    %c0_i32_1 = arith.constant 0 : i32
    return %c0_i32, %c0_i32_0 : i32, i32
  }
  func.func @transform_2(%arg0: i32) -> (i32, i32) {
    %c0_i32 = arith.constant 0 : i32
    %c0_i32_0 = arith.constant 0 : i32
    %c0_i32_1 = arith.constant 0 : i32
    return %c0_i32, %c0_i32_0 : i32, i32
  }
  func.func @transform_3(%arg0: i32) -> (i32, i32) {
    %c0_i32 = arith.constant 0 : i32
    %c0_i32_0 = arith.constant 0 : i32
    %c0_i32_1 = arith.constant 0 : i32
    return %c0_i32, %c0_i32_0 : i32, i32
  }
  func.func @transform_4(%arg0: i32) -> (i32, i32, i32) {
    %c0_i32 = arith.constant 0 : i32
    %c0_i32_0 = arith.constant 0 : i32
    %c0_i32_1 = arith.constant 0 : i32
    return %arg0, %c0_i32, %c0_i32_0 : i32, i32, i32
  }
  func.func @transform_5(%arg0: i32) -> (i32, i32, i32) {
    %c0_i32 = arith.constant 0 : i32
    %c0_i32_0 = arith.constant 0 : i32
    %c0_i32_1 = arith.constant 0 : i32
    return %arg0, %c0_i32, %c0_i32_0 : i32, i32, i32
  }
}

module attributes {stable_mosaic.version = 11 : i64} {
  func.func @_bn1_conv2_bn2_out_kernel(%arg0: i32, %arg1: memref<16x8xbf16, #tpu.memory_space<vmem>>, %arg2: memref<1x8xf32, #tpu.memory_space<vmem>>, %arg3: memref<1x8xf32, #tpu.memory_space<vmem>>, %arg4: memref<24x8xbf16, #tpu.memory_space<vmem>>, %arg5: memref<1x8xf32, #tpu.memory_space<vmem>>, %arg6: memref<1x8xf32, #tpu.memory_space<vmem>>, %arg7: memref<2x8x8xf32, #tpu.memory_space<vmem>>) attributes {dimension_semantics = [#tpu.dimension_semantics<parallel>], iteration_bounds = array<i64: 1>, scalar_prefetch = 0 : i64, scratch_operands = 0 : i64, tpu.core_type = #tpu.core_type<tc>, window_params = [{transform_indices = @transform_0, window_bounds = array<i64: 16, 8>}, {pipeline_mode = #tpu.pipeline_mode<synchronous>, transform_indices = @transform_1, window_bounds = array<i64: 1, 8>}, {pipeline_mode = #tpu.pipeline_mode<synchronous>, transform_indices = @transform_2, window_bounds = array<i64: 1, 8>}, {pipeline_mode = #tpu.pipeline_mode<synchronous>, transform_indices = @transform_3, window_bounds = array<i64: 24, 8>}, {pipeline_mode = #tpu.pipeline_mode<synchronous>, transform_indices = @transform_4, window_bounds = array<i64: 1, 8>}, {pipeline_mode = #tpu.pipeline_mode<synchronous>, transform_indices = @transform_5, window_bounds = array<i64: 1, 8>}, {transform_indices = @transform_6, window_bounds = array<i64: 2, 8, 8>}]} {
    %c0 = arith.constant 0 : index
    %c0_0 = arith.constant 0 : index
    %0 = vector.load %arg1[%c0, %c0_0] : memref<16x8xbf16, #tpu.memory_space<vmem>>, vector<16x8xbf16>
    %1 = arith.extf %0 : vector<16x8xbf16> to vector<16x8xf32>
    %c0_1 = arith.constant 0 : index
    %c0_2 = arith.constant 0 : index
    %2 = vector.load %arg2[%c0_1, %c0_2] : memref<1x8xf32, #tpu.memory_space<vmem>>, vector<1x8xf32>
    %3 = vector.broadcast %2 : vector<1x8xf32> to vector<16x8xf32>
    %4 = arith.mulf %1, %3 : vector<16x8xf32>
    %c0_3 = arith.constant 0 : index
    %c0_4 = arith.constant 0 : index
    %5 = vector.load %arg3[%c0_3, %c0_4] : memref<1x8xf32, #tpu.memory_space<vmem>>, vector<1x8xf32>
    %6 = vector.broadcast %5 : vector<1x8xf32> to vector<16x8xf32>
    %7 = arith.addf %4, %6 : vector<16x8xf32>
    %cst = arith.constant 0.000000e+00 : f32
    %8 = vector.broadcast %cst : f32 to vector<16x8xf32>
    %9 = arith.maximumf %7, %8 : vector<16x8xf32>
    %10 = tpu.iota {dimensions = array<i32: 0>} : vector<16x8xi32>
    %c7_i32 = arith.constant 7 : i32
    %11 = vector.broadcast %c7_i32 : i32 to vector<16x8xi32>
    %12 = arith.andi %10, %11 : vector<16x8xi32>
    %c0_i32 = arith.constant 0 : i32
    %13 = vector.broadcast %c0_i32 : i32 to vector<16x8xi32>
    %14 = arith.cmpi sgt, %12, %13 : vector<16x8xi32>
    %c1_i32 = arith.constant 1 : i32
    %15 = tpu.dynamic_rotate %9 by %c1_i32 dim 0 : vector<16x8xf32>, i32 -> vector<16x8xf32>
    %cst_5 = arith.constant 0.000000e+00 : f32
    %16 = vector.broadcast %cst_5 : f32 to vector<16x8xf32>
    %17 = arith.select %14, %15, %16 : vector<16x8xi1>, vector<16x8xf32>
    %c7_i32_6 = arith.constant 7 : i32
    %18 = vector.broadcast %c7_i32_6 : i32 to vector<16x8xi32>
    %19 = arith.cmpi slt, %12, %18 : vector<16x8xi32>
    %c15_i32 = arith.constant 15 : i32
    %20 = tpu.dynamic_rotate %9 by %c15_i32 dim 0 : vector<16x8xf32>, i32 -> vector<16x8xf32>
    %cst_7 = arith.constant 0.000000e+00 : f32
    %21 = vector.broadcast %cst_7 : f32 to vector<16x8xf32>
    %22 = arith.select %19, %20, %21 : vector<16x8xi1>, vector<16x8xf32>
    %23 = tpu.concatenate %17, %9, %22 in 1 : vector<16x8xf32>, vector<16x8xf32>, vector<16x8xf32> -> vector<16x24xf32>
    %24 = arith.truncf %23 : vector<16x24xf32> to vector<16x24xbf16>
    %c0_8 = arith.constant 0 : index
    %c0_9 = arith.constant 0 : index
    %25 = vector.load %arg4[%c0_8, %c0_9] : memref<24x8xbf16, #tpu.memory_space<vmem>>, vector<24x8xbf16>
    %cst_10 = arith.constant dense<0.000000e+00> : vector<16x8xf32>
    %26 = tpu.matmul %24, %25, %cst_10 {dimension_numbers = #tpu.dot_dimension_numbers<[1], [0], [0], [1], [0, 0, 1, 1], [], []>} : vector<16x24xbf16>, vector<24x8xbf16>, vector<16x8xf32> -> vector<16x8xf32>
    %c0_11 = arith.constant 0 : index
    %c0_12 = arith.constant 0 : index
    %27 = vector.load %arg5[%c0_11, %c0_12] : memref<1x8xf32, #tpu.memory_space<vmem>>, vector<1x8xf32>
    %28 = vector.broadcast %27 : vector<1x8xf32> to vector<16x8xf32>
    %29 = arith.mulf %26, %28 : vector<16x8xf32>
    %c0_13 = arith.constant 0 : index
    %c0_14 = arith.constant 0 : index
    %30 = vector.load %arg6[%c0_13, %c0_14] : memref<1x8xf32, #tpu.memory_space<vmem>>, vector<1x8xf32>
    %31 = vector.broadcast %30 : vector<1x8xf32> to vector<16x8xf32>
    %32 = arith.addf %29, %31 : vector<16x8xf32>
    %cst_15 = arith.constant 0.000000e+00 : f32
    %33 = vector.broadcast %cst_15 : f32 to vector<16x8xf32>
    %34 = arith.maximumf %32, %33 : vector<16x8xf32>
    %35 = vector.shape_cast %34 : vector<16x8xf32> to vector<2x8x8xf32>
    %36 = tpu.transpose %35, [0, 2, 1] : vector<2x8x8xf32> -> vector<2x8x8xf32>
    %c0_16 = arith.constant 0 : index
    %c0_17 = arith.constant 0 : index
    %c0_18 = arith.constant 0 : index
    %37 = vector.load %arg7[%c0_16, %c0_17, %c0_18] : memref<2x8x8xf32, #tpu.memory_space<vmem>>, vector<2x8x8xf32>
    tpu.vector_store %arg7[%c0_16, %c0_17, %c0_18], %36 {strides = array<i32>} : memref<2x8x8xf32, #tpu.memory_space<vmem>>, vector<2x8x8xf32>,
    return
  }
  func.func @transform_0(%arg0: i32) -> (i32, i32) {
    %c0_i32 = arith.constant 0 : i32
    %c0_i32_0 = arith.constant 0 : i32
    return %arg0, %c0_i32 : i32, i32
  }
  func.func @transform_1(%arg0: i32) -> (i32, i32) {
    %c0_i32 = arith.constant 0 : i32
    %c0_i32_0 = arith.constant 0 : i32
    %c0_i32_1 = arith.constant 0 : i32
    return %c0_i32, %c0_i32_0 : i32, i32
  }
  func.func @transform_2(%arg0: i32) -> (i32, i32) {
    %c0_i32 = arith.constant 0 : i32
    %c0_i32_0 = arith.constant 0 : i32
    %c0_i32_1 = arith.constant 0 : i32
    return %c0_i32, %c0_i32_0 : i32, i32
  }
  func.func @transform_3(%arg0: i32) -> (i32, i32) {
    %c0_i32 = arith.constant 0 : i32
    %c0_i32_0 = arith.constant 0 : i32
    %c0_i32_1 = arith.constant 0 : i32
    return %c0_i32, %c0_i32_0 : i32, i32
  }
  func.func @transform_4(%arg0: i32) -> (i32, i32) {
    %c0_i32 = arith.constant 0 : i32
    %c0_i32_0 = arith.constant 0 : i32
    %c0_i32_1 = arith.constant 0 : i32
    return %c0_i32, %c0_i32_0 : i32, i32
  }
  func.func @transform_5(%arg0: i32) -> (i32, i32) {
    %c0_i32 = arith.constant 0 : i32
    %c0_i32_0 = arith.constant 0 : i32
    %c0_i32_1 = arith.constant 0 : i32
    return %c0_i32, %c0_i32_0 : i32, i32
  }
  func.func @transform_6(%arg0: i32) -> (i32, i32, i32) {
    %c0_i32 = arith.constant 0 : i32
    %c0_i32_0 = arith.constant 0 : i32
    %c0_i32_1 = arith.constant 0 : i32
    return %arg0, %c0_i32, %c0_i32_0 : i32, i32, i32
  }
}

</mosaic_0001>

<bundles_post_ra>
// kernel: down_forward.4
= control target key start
LH: loop header
LB: loop body
LE: loop exit
PB: predicated region body
PF: predicated region fallthrough
CT: control target
= control target key end

     0   :  { %v44_v0 = vlaneseq  ;;  %v218_v3 = vmov 0.0   ;;  %vm106_vm0 = vcmask 1043456   ;;  %vm219_vm1 = vmmov 0   ;;  %s293_s0 = inlined_call_operand.vmem [shape: bf16[16,8], index: 0, kind: input, shape index: {}]   ;;  %s294_s1 = inlined_call_operand.vmem [shape: f32[1,8], index: 1, kind: input, shape index: {}]   ;;  %s295_s2 = inlined_call_operand.vmem [shape: f32[1,8], index: 2, kind: input, shape index: {}]   ;;  %s296_s3 = inlined_call_operand.vmem [shape: bf16[24,8], index: 3, kind: input, shape index: {}]   ;;  %s297_s4 = inlined_call_operand.vmem [shape: f32[1,1,8], index: 4, kind: output, shape index: {0}]   ;;  %s298_s5 = inlined_call_operand.vmem [shape: f32[1,1,8], index: 5, kind: output, shape index: {1}]  }
   0x1   :  { %v188_v1 = vld [vmem:[%s293_s0] sm:$0xff]   ;;  %194 = vmatprep.subr.bf16.mxu0 %v218_v3  ;;  %v217_v9 = vld [vmem:[%s296_s3 + $0x8] ss:$0 sps:$4 sm:$0xff]   ;;  %198 = vmatprep.mubr.msk.bf16.mxu0 %vm219_vm1, %v218_v3  ;;  %s220_s0 = smov 8   ;;  %vm83_vm8 = vcmask 64512   ;;  %vm86_vm9 = vcmask 130048  }
   0x2   :  { %v182_v2 = vld [vmem:[%s294_s1] ss:$0 sm:$0xff]  ;;  %v189_v4 = vunpack.c.l.bf16 %v188_v1  ;;  %v190_v5 = vunpack.c.h.bf16 %v188_v1  ;;  %v45_v6 = vshrl.u32 %v44_v0, 7  ;;  %v108_v17 = vsel %vm106_vm0, %v217_v9, 0  ;;  %s221_s1 = smov 16  }
   0x3   :  { %v216_v7 = vld [vmem:[%s296_s3] sm:$0xff]   ;;  %vm102_vm10 = vcmask 195584   ;;  %vm160_vm11 = vcmask 57344  }
   0x4   :  { %v183_v8 = vld [vmem:[%s295_s2] ss:$0 sm:$0xff]  ;;  %v31_v10 = vmul.f32 %v189_v4, %v182_v2  ;;  %v32_v11 = vmul.f32 %v190_v5, %v182_v2  ;;  %v46_v12 = vadd.s32 8, %v45_v6  ;;  %195 = vmatpush3.bf16.msra.mxu0 %v216_v7  ;;  %v47_v15 = vand.u32 7, %v45_v6 }
   0x5   :  { %196 = vmatprep.subr.bf16.mxu0 %v218_v3  ;;  %vm62_vm2 = vcmp.lt.s32.totalorder %v45_v6, 7  ;;  %vm53_vm5 = vcmp.lt.s32.totalorder %v45_v6, 1 }
   0x6   :  { %v40_v13 = vadd.f32 %v183_v8, %v31_v10  ;;  %v41_v14 = vadd.f32 %v183_v8, %v32_v11  ;;  %v48_v16 = vand.u32 7, %v46_v12  ;;  %vm267_vm3 = vcmp.gt.s32.totalorder %v47_v15, 0 }
   0x7   :  { %vm58_vm6 = vcmp.lt.s32.totalorder %v47_v15, 7 }
   0x8   :  { %v42_v18 = vmax.f32 %v40_v13, 0.0  ;;  %v43_v19 = vmax.f32 %v41_v14, 0.0  ;;  %197 = vmatpush3.bf16.msra.mxu0 %v108_v17  ;;  %vm271_vm4 = vcmp.gt.s32.totalorder %v48_v16, 0  ;;  %vm59_vm7 = vcmp.lt.s32.totalorder %v48_v16, 7 }
   0xa   :  { %v52_v22 = vrot.slane %v43_v19, 7  ;;  %v206_v23 = vpack.i.bf16 %v43_v19, %v42_v18  ;;  %v51_v24 = vrot.slane %v42_v18, 7  ;;  %v60_v25 = vrot.slane %v42_v18, 1 }
   0xb   :  { %v61_v26 = vrot.slane %v43_v19, 1 }
   0xc   :  { %207 = vrot.lane.b32.xlu0 %v206_v23, %s220_s0  ;;  %v54_v27 = vsel %vm53_vm5, %v51_v24, %v52_v22  ;;  %v55_v28 = vsel %vm53_vm5, %v52_v22, %v51_v24 }
   0xd   :  { %v63_v29 = vsel %vm62_vm2, %v60_v25, %v61_v26  ;;  %v64_v30 = vsel %vm62_vm2, %v61_v26, %v60_v25  ;;  %v56_v31 = vsel %vm267_vm3, %v55_v28, 0.0  ;;  %v57_v32 = vsel %vm271_vm4, %v54_v27, 0.0 }
   0xe   :  { %v65_v33 = vsel %vm58_vm6, %v63_v29, 0.0  ;;  %v66_v34 = vsel %vm59_vm7, %v64_v30, 0.0 }
   0xf   :  { %v211_v35 = vpack.i.bf16 %v66_v34, %v65_v33 }
  0x11   :  { %212 = vrot.lane.b32.xlu0 %v211_v35, %s221_s1 }
  0x7e   :  { %v208_v36 = vpop.permute.xlu0 %207 }
  0x7f   :  { %v210_v37 = vunpack.i.h.bf16 %v208_v36  ;;  %v209_v38 = vunpack.i.l.bf16 %v208_v36 }
  0x81   :  { %v84_v42 = vsel %vm83_vm8, %v56_v31, %v209_v38  ;;  %v85_v43 = vsel %vm83_vm8, %v57_v32, %v210_v37 }
  0x83   :  { %v213_v39 = vpop.permute.xlu0 %212 }
  0x84   :  { %v215_v40 = vunpack.i.h.bf16 %v213_v39  ;;  %v214_v41 = vunpack.i.l.bf16 %v213_v39 }
  0x86   :  { %v87_v44 = vsel %vm86_vm9, %v84_v42, %v214_v41  ;;  %v88_v45 = vsel %vm86_vm9, %v85_v43, %v215_v40 }
  0x87   :  { %v89_v46 = vpack.c.bf16 %v88_v45, %v87_v44 }
  0x89   :  { %199 = vmatmul.mubr.msk.bf16.vlgmr.msra.gmra.mrb[0].mxu0 %vm102_vm10, %v89_v46 }
 0x15c   :  { %v144_v47 = vpop.f32.mrb[0].mxu0 }
 0x15d   :  { %v162_v48 = vmul.f32 %v144_v47, %v144_v47  ;;  %v200_v49 = vpop.f32.mrb[1].mxu0  ;;  %v151_v51 = vsel %vm83_vm8, %v144_v47, 0.0 }
 0x15e   :  { %v147_v50 = vpop.f32.mrb[2].mxu0 }
 0x15f   :  { %v152_v52 = vsel %vm83_vm8, %v147_v50, 0.0  ;;  %v163_v53 = vmul.f32 %v147_v50, %v147_v50  ;;  %v201_v54 = vpop.f32.mrb[3].mxu0  ;;  %v164_v56 = vsel %vm83_vm8, %v162_v48, 0.0 }
 0x160   :  { %v153_v55 = vadd.f32 %v152_v52, %v151_v51 }
 0x161   :  { %v165_v57 = vsel %vm83_vm8, %v163_v53, 0.0 }
 0x162   :  { %v154_v58 = vrot.slane %v153_v55, 4  ;;  %v166_v59 = vadd.f32 %v165_v57, %v164_v56 }
 0x164   :  { %v155_v60 = vadd.f32 %v154_v58, %v153_v55  ;;  %v167_v61 = vrot.slane %v166_v59, 4 }
 0x166   :  { %v156_v62 = vrot.slane %v155_v60, 2  ;;  %v168_v63 = vadd.f32 %v167_v61, %v166_v59 }
 0x168   :  { %v157_v0 = vadd.f32 %v156_v62, %v155_v60  ;;  %v169_v1 = vrot.slane %v168_v63, 2 }
 0x16a   :  { %v158_v2 = vrot.slane %v157_v0, 1  ;;  %v170_v3 = vadd.f32 %v169_v1, %v168_v63 }
 0x16c   :  { %v159_v4 = vadd.f32 %v158_v2, %v157_v0  ;;  %v171_v5 = vrot.slane %v170_v3, 1 }
 0x16e   :  { %161 = vst.msk [vmem:[%s297_s4] sm:$0x1] %vm160_vm11, %v159_v4  ;;  %v172_v6 = vadd.f32 %v171_v5, %v170_v3 }
 0x170   :  { %173 = vst.msk [vmem:[%s298_s5] sm:$0x1] %vm160_vm11, %v172_v6 }

// kernel: down_forward.3
= control target key start
LH: loop header
LB: loop body
LE: loop exit
PB: predicated region body
PF: predicated region fallthrough
CT: control target
= control target key end

     0   :  { %s210_s19 = smov 124   ;;  %v27_v3 = vlaneseq  ;;  %vm84_vm0 = vcmask 1045504   ;;  %v211_v10 = vmov 0.0   ;;  %vm212_vm1 = vmmov 0   ;;  %s279_s0 = inlined_call_operand.vmem [shape: f32[16,8], index: 0, kind: input, shape index: {}]   ;;  %s280_s1 = inlined_call_operand.vmem [shape: bf16[12,8], index: 1, kind: input, shape index: {}]   ;;  %s281_s2 = inlined_call_operand.vmem [shape: bf16[16,8], index: 2, kind: output, shape index: {0}]   ;;  %s282_s3 = inlined_call_operand.vmem [shape: f32[1,1,8], index: 3, kind: output, shape index: {1}]   ;;  %s283_s4 = inlined_call_operand.vmem [shape: f32[1,1,8], index: 4, kind: output, shape index: {2}]  }
   0x1   :  { %v15_v0 = vld [vmem:[%s279_s0] sm:$0xff]  ;;  %v16_v1 = vld [vmem:[%s279_s0 + $0x8] sm:$0xff]  ;;  %183 = vmatprep.subr.bf16.mxu0 %v211_v10  ;;  %185 = vmatprep.mubr.msk.bf16.mxu0 %vm212_vm1, %v211_v10  ;;  %s213_s0 = smov 4   ;;  %vm66_vm8 = vcmask 31744   ;;  %vm69_vm9 = vcmask 64512   ;;  %vm80_vm10 = vcmask 97280  }
   0x2   :  { %v194_v2 = vpack.i.bf16 %v16_v1, %v15_v0  ;;  %v28_v4 = vshrl.u32 %v27_v3, 7  ;;  %v209_v6 = vld [vmem:[%s280_s1] sm:$0x3f]   ;;  %s214_s1 = smov 8   ;;  %vm137_vm11 = vcmask 60416   ;;  %vm149_vm12 = vcmask 57344  }
   0x3   :  { %v86_v11 = vsel %vm84_vm0, %v209_v6, 0 }
   0x4   :  { %195 = vrot.lane.b32.xlu0 %v194_v2, %s210_s19  ;;  %v29_v5 = vadd.s32 8, %v28_v4  ;;  %v30_v8 = vand.u32 7, %v28_v4  ;;  %184 = vmatpush3.bf16.msra.mxu0 %v86_v11  ;;  %vm45_vm4 = vcmp.lt.s32.totalorder %v28_v4, 7  ;;  %vm36_vm5 = vcmp.lt.s32.totalorder %v28_v4, 1 }
   0x6   :  { %v31_v9 = vand.u32 7, %v29_v5  ;;  %vm249_vm2 = vcmp.gt.s32.totalorder %v30_v8, 0  ;;  %vm41_vm6 = vcmp.lt.s32.totalorder %v30_v8, 7 }
   0x8   :  { %vm253_vm3 = vcmp.gt.s32.totalorder %v31_v9, 0  ;;  %vm42_vm7 = vcmp.lt.s32.totalorder %v31_v9, 7 }
  0x76   :  { %v196_v7 = vpop.permute.xlu0 %195 }
  0x77   :  { %v198_v12 = vunpack.i.h.bf16 %v196_v7  ;;  %v197_v13 = vunpack.i.l.bf16 %v196_v7 }
  0x79   :  { %v26_v14 = vmax.f32 %v16_v1, %v198_v12  ;;  %v25_v15 = vmax.f32 %v15_v0, %v197_v13 }
  0x7b   :  { %v35_v18 = vrot.slane %v26_v14, 7  ;;  %v34_v19 = vrot.slane %v25_v15, 7  ;;  %v199_v20 = vpack.i.bf16 %v26_v14, %v25_v15  ;;  %v43_v21 = vrot.slane %v25_v15, 1 }
  0x7c   :  { %v44_v22 = vrot.slane %v26_v14, 1 }
  0x7d   :  { %200 = vrot.lane.b32.xlu0 %v199_v20, %s213_s0  ;;  %v37_v23 = vsel %vm36_vm5, %v34_v19, %v35_v18  ;;  %v38_v24 = vsel %vm36_vm5, %v35_v18, %v34_v19 }
  0x7e   :  { %v46_v25 = vsel %vm45_vm4, %v43_v21, %v44_v22  ;;  %v47_v26 = vsel %vm45_vm4, %v44_v22, %v43_v21  ;;  %v39_v27 = vsel %vm249_vm2, %v38_v24, 0.0  ;;  %v40_v28 = vsel %vm253_vm3, %v37_v23, 0.0 }
  0x7f   :  { %v48_v29 = vsel %vm41_vm6, %v46_v25, 0.0  ;;  %v49_v30 = vsel %vm42_vm7, %v47_v26, 0.0 }
  0x80   :  { %v204_v31 = vpack.i.bf16 %v49_v30, %v48_v29 }
  0x82   :  { %205 = vrot.lane.b32.xlu1 %v204_v31, %s214_s1 }
  0xef   :  { %v201_v32 = vpop.permute.xlu0 %200 }
  0xf0   :  { %v203_v33 = vunpack.i.h.bf16 %v201_v32  ;;  %v202_v34 = vunpack.i.l.bf16 %v201_v32 }
  0xf2   :  { %v67_v38 = vsel %vm66_vm8, %v39_v27, %v202_v34  ;;  %v68_v39 = vsel %vm66_vm8, %v40_v28, %v203_v33 }
  0xf4   :  { %v206_v35 = vpop.permute.xlu1 %205 }
  0xf5   :  { %v208_v36 = vunpack.i.h.bf16 %v206_v35  ;;  %v207_v37 = vunpack.i.l.bf16 %v206_v35 }
  0xf7   :  { %v70_v40 = vsel %vm69_vm9, %v67_v38, %v207_v37  ;;  %v71_v41 = vsel %vm69_vm9, %v68_v39, %v208_v36 }
  0xf8   :  { %v72_v42 = vpack.c.bf16 %v71_v41, %v70_v40 }
  0xfa   :  { %186 = vmatmul.mubr.msk.bf16.vlgmr.msra.gmra.mrb[0].mxu0 %vm80_vm10, %v72_v42 }
 0x1cd   :  { %v122_v43 = vpop.f32.mrb[0].mxu0 }
 0x1ce   :  { %v179_v44 = vpack.c.bf16 %v122_v43, %v122_v43  ;;  %v151_v45 = vmul.f32 %v122_v43, %v122_v43  ;;  %v187_v46 = vpop.f32.mrb[1].mxu0  ;;  %v140_v48 = vsel %vm69_vm9, %v122_v43, 0.0 }
 0x1cf   :  { %v125_v47 = vpop.f32.mrb[2].mxu0 }
 0x1d0   :  { %138 = vst.msk [vmem:[%s281_s2] sm:$0xf] %vm137_vm11, %v179_v44  ;;  %v180_v49 = vpack.c.bf16 %v125_v47, %v125_v47  ;;  %v141_v50 = vsel %vm69_vm9, %v125_v47, 0.0  ;;  %v152_v51 = vmul.f32 %v125_v47, %v125_v47  ;;  %v188_v52 = vpop.f32.mrb[3].mxu0  ;;  %v153_v54 = vsel %vm69_vm9, %v151_v45, 0.0 }
 0x1d1   :  { %v142_v53 = vadd.f32 %v141_v50, %v140_v48 }
 0x1d2   :  { %139 = vst.msk [vmem:[%s281_s2 + $0x4] sm:$0xf] %vm137_vm11, %v180_v49  ;;  %v154_v55 = vsel %vm69_vm9, %v152_v51, 0.0 }
 0x1d3   :  { %v143_v56 = vrot.slane %v142_v53, 4  ;;  %v155_v57 = vadd.f32 %v154_v55, %v153_v54 }
 0x1d5   :  { %v144_v58 = vadd.f32 %v143_v56, %v142_v53  ;;  %v156_v59 = vrot.slane %v155_v57, 4 }
 0x1d7   :  { %v145_v60 = vrot.slane %v144_v58, 2  ;;  %v157_v61 = vadd.f32 %v156_v59, %v155_v57 }
 0x1d9   :  { %v146_v62 = vadd.f32 %v145_v60, %v144_v58  ;;  %v158_v63 = vrot.slane %v157_v61, 2 }
 0x1db   :  { %v147_v0 = vrot.slane %v146_v62, 1  ;;  %v159_v1 = vadd.f32 %v158_v63, %v157_v61 }
 0x1dd   :  { %v148_v2 = vadd.f32 %v147_v0, %v146_v62  ;;  %v160_v3 = vrot.slane %v159_v1, 1 }
 0x1df   :  { %150 = vst.msk [vmem:[%s282_s3] sm:$0x1] %vm149_vm12, %v148_v2  ;;  %v161_v4 = vadd.f32 %v160_v3, %v159_v1 }
 0x1e1   :  { %162 = vst.msk [vmem:[%s283_s4] sm:$0x1] %vm149_vm12, %v161_v4 }

// kernel: down_forward.5
= control target key start
LH: loop header
LB: loop body
LE: loop exit
PB: predicated region body
PF: predicated region fallthrough
CT: control target
= control target key end

     0   :  { %v49_v2 = vlaneseq  ;;  %v322_v8 = vmov 0.0   ;;  %vm111_vm0 = vcmask 1043456   ;;  %s416_s0 = inlined_call_operand.vmem [shape: bf16[16,8], index: 0, kind: input, shape index: {}]   ;;  %s417_s1 = inlined_call_operand.vmem [shape: f32[1,8], index: 1, kind: input, shape index: {}]   ;;  %s418_s2 = inlined_call_operand.vmem [shape: f32[1,8], index: 2, kind: input, shape index: {}]   ;;  %s419_s3 = inlined_call_operand.vmem [shape: bf16[24,8], index: 3, kind: input, shape index: {}]   ;;  %s420_s4 = inlined_call_operand.vmem [shape: f32[1,8], index: 4, kind: input, shape index: {}]   ;;  %s421_s5 = inlined_call_operand.vmem [shape: f32[1,8], index: 5, kind: input, shape index: {}]   ;;  %s422_s6 = inlined_call_operand.hbm [shape: f32[2,8,8], index: 6, kind: output, shape index: {}]  }
   0x1   :  { %v266_v0 = vld [vmem:[%s416_s0] sm:$0xff]   ;;  %272 = vmatprep.subr.bf16.mxu0 %v322_v8  ;;  %v297_v11 = vld [vmem:[%s419_s3 + $0x8] ss:$0 sps:$4 sm:$0xff]  }
   0x2   :  { %v258_v1 = vld [vmem:[%s417_s1] ss:$0 sm:$0xff]  ;;  %v267_v3 = vunpack.c.l.bf16 %v266_v0  ;;  %v268_v4 = vunpack.c.h.bf16 %v266_v0  ;;  %v50_v7 = vshrl.u32 %v49_v2, 7 }
   0x3   :  { %v259_v5 = vld [vmem:[%s418_s2] ss:$0 sm:$0xff] }
   0x4   :  { %v296_v6 = vld [vmem:[%s419_s3] sm:$0xff]   ;;  %v36_v9 = vmul.f32 %v267_v3, %v258_v1  ;;  %v37_v10 = vmul.f32 %v268_v4, %v258_v1 }
   0x5   :  { %273 = vmatpush3.bf16.msra.mxu0 %v296_v6 }
   0x6   :  { %11 = vsyncpa [#allocation3], 0  ;;  %v51_v12 = vadd.s32 8, %v50_v7  ;;  %274 = vmatprep.subr.bf16.mxu0 %v322_v8  ;;  %v45_v13 = vadd.f32 %v259_v5, %v36_v9  ;;  %v46_v14 = vadd.f32 %v259_v5, %v37_v10  ;;  %v113_v15 = vsel %vm111_vm0, %v297_v11, 0  ;;  %s324_s1 = smov 8   ;;  %s325_s2 = smov 16  }
   0x7   :  { %v52_v16 = vand.u32 7, %v50_v7  ;;  %vm323_vm1 = vmmov 0   ;;  %vm67_vm2 = vcmp.lt.s32.totalorder %v50_v7, 7  ;;  %vm58_vm5 = vcmp.lt.s32.totalorder %v50_v7, 1  ;;  %v263_v47 = vld [vmem:[%s420_s4] ss:$0 sm:$0xff] }
   0x8   :  { %v53_v17 = vand.u32 7, %v51_v12  ;;  %v47_v18 = vmax.f32 %v45_v13, 0.0  ;;  %v48_v19 = vmax.f32 %v46_v14, 0.0  ;;  %276 = vmatprep.mubr.msk.bf16.mxu0 %vm323_vm1, %v322_v8  ;;  %vm88_vm8 = vcmask 64512   ;;  %v264_v49 = vld [vmem:[%s421_s5] ss:$0 sm:$0xff] }
   0x9   :  { %275 = vmatpush3.bf16.msra.mxu0 %v113_v15  ;;  %vm378_vm3 = vcmp.gt.s32.totalorder %v52_v16, 0  ;;  %vm63_vm6 = vcmp.lt.s32.totalorder %v52_v16, 7  ;;  %vm91_vm9 = vcmask 130048   ;;  %vm107_vm10 = vcmask 195584   ;;  %s326_s9 = smov [#allocation2]  }
   0xa   :  { %vm382_vm4 = vcmp.gt.s32.totalorder %v53_v17, 0  ;;  %v57_v22 = vrot.slane %v48_v19, 7  ;;  %v286_v23 = vpack.i.bf16 %v48_v19, %v47_v18  ;;  %v56_v24 = vrot.slane %v47_v18, 7  ;;  %s247_s10 = sshll.u32 %s326_s9, 4  ;;  %s248_s10 = int_to_ptr.vmem [resolvable:$true] %s247_s10 }
   0xb   :  { %v65_v25 = vrot.slane %v47_v18, 1  ;;  %vm64_vm7 = vcmp.lt.s32.totalorder %v53_v17, 7  ;;  %v66_v26 = vrot.slane %v48_v19, 1  ;;  %s298_s4 = scalar_lea.vmem %s248_s10, 256  ;;  %p303_p1 = scmp.lt.s32.totalorder %s248_s10, %s248_s10 }
   0xc   :  { %287 = vrot.lane.b32.xlu0 %v286_v23, %s324_s1  ;;  %v59_v27 = vsel %vm58_vm5, %v56_v24, %v57_v22  ;;  %v60_v28 = vsel %vm58_vm5, %v57_v22, %v56_v24  ;;  %p299_p0 = scmp.ne.s32.totalorder %s248_s10, %s298_s4  ;;  %p304_p2 = scmp.lt.s32.totalorder %s298_s4, %s298_s4 }
   0xd   :  { %v68_v29 = vsel %vm67_vm2, %v65_v25, %v66_v26  ;;  %v69_v30 = vsel %vm67_vm2, %v66_v26, %v65_v25  ;;  %v61_v31 = vsel %vm378_vm3, %v60_v28, 0.0  ;;  %v62_v32 = vsel %vm382_vm4, %v59_v27, 0.0 }
   0xe   :  { %v70_v33 = vsel %vm63_vm6, %v68_v29, 0.0  ;;  %v71_v34 = vsel %vm64_vm7, %v69_v30, 0.0  ;;  %p305_p3 = por %p304_p2, %p303_p1 }
   0xf   :  { %v291_v35 = vpack.i.bf16 %v71_v34, %v70_v33 }
  0x10   :  { %p306_p4 = pnand %p305_p3, %p299_p0 }
  0x11   :  { %292 = vrot.lane.b32.xlu0 %v291_v35, %s325_s2 }
  0x7e   :  { %v288_v36 = vpop.permute.xlu0 %287 }
  0x7f   :  { %v290_v37 = vunpack.i.h.bf16 %v288_v36  ;;  %v289_v38 = vunpack.i.l.bf16 %v288_v36 }
  0x81   :  { %v89_v42 = vsel %vm88_vm8, %v61_v31, %v289_v38  ;;  %v90_v43 = vsel %vm88_vm8, %v62_v32, %v290_v37 }
  0x83   :  { %v293_v39 = vpop.permute.xlu0 %292 }
  0x84   :  { %v295_v40 = vunpack.i.h.bf16 %v293_v39  ;;  %v294_v41 = vunpack.i.l.bf16 %v293_v39 }
  0x86   :  { %v92_v44 = vsel %vm91_vm9, %v89_v42, %v294_v41  ;;  %v93_v45 = vsel %vm91_vm9, %v90_v43, %v295_v40 }
  0x87   :  { %v94_v46 = vpack.c.bf16 %v93_v45, %v92_v44 }
  0x89   :  { %277 = vmatmul.mubr.msk.bf16.vlgmr.msra.gmra.mrb[0].mxu0 %vm107_vm10, %v94_v46 }
 0x15c   :  { %v149_v48 = vpop.f32.mrb[0].mxu0 }
 0x15d   :  { %v163_v50 = vmul.f32 %v263_v47, %v149_v48  ;;  %v278_v51 = vpop.f32.mrb[1].mxu0 }
 0x15e   :  { %v152_v52 = vpop.f32.mrb[2].mxu0 }
 0x15f   :  { %v164_v53 = vmul.f32 %v263_v47, %v152_v52  ;;  %v279_v54 = vpop.f32.mrb[3].mxu0  ;;  %v172_v55 = vadd.f32 %v264_v49, %v163_v50 }
 0x161   :  { %v174_v56 = vmax.f32 %v172_v55, 0.0  ;;  %v173_v57 = vadd.f32 %v264_v49, %v164_v53 }
 0x163   :  { %176 = vxpose.xlu1.b32.start.end [1/1] (short) (narrow) %v174_v56, 8  ;;  %v175_v58 = vmax.f32 %v173_v57, 0.0 }
 0x167   :  { %208 = vxpose.xlu1.b32.start.end [1/1] (short) (narrow) %v175_v58, 8 }
 0x1e3   :  { %v192_v59 = vpop.trf.xlu1 }
 0x1e4   :  { %240 = vst.msk [vmem:[#allocation2] sm:$0xff] %vm88_vm8, %v192_v59 }
 0x1e7   :  { %v224_v60 = vpop.trf.xlu1 }
 0x1e8   :  { %241 = vst.msk [vmem:[#allocation2 + $0x8] sm:$0xff] %vm88_vm8, %v224_v60 }
 0x1e9   :  { %309 = shalt.err (!%p306_p4)
}
 0x1ea   :  { %s310_s12 = scalar_lea.hbm %s422_s6, 256 }
 0x1eb   :  { %p311_p5 = scmp.ne.s32.totalorder %s422_s6, %s310_s12  ;;  %p314_p6 = scmp.lt.u32.totalorder %s310_s12, %s422_s6 }
 0x1ed   :  { %p316_p7 = pnand %p314_p6, %p311_p5 }
 0x1ef   :  { %319 = shalt.err (!%p316_p7)
}
 0x1f0   :  { %s327_s17 = smov 128  }
 0x1f1   :  { %253 = dma.vmem_to_hbm [thread:$0]  %s248_s10, 256, %s422_s6, [#allocation3], %s327_s17, %s327_s17, %s324_s1  }
 0x1f2   :  { %320 = dma.done.wait [#allocation3], 256  }
 0x1f3   :  { %321 = vsyncadd [#allocation3], 4294967040 }
 0x1f4   :  { %257 = vsyncpa [#allocation3], 1 }

</bundles_post_ra>
